<compile_context>
chip_gen: v6e
topology: v6e:2x2x1
jax: 0.10.0
libtpu: 0.0.40
codegen_flags: <defaults>
</compile_context>

<pallas_src>
import functools

import jax
import jax.numpy as jnp
from jax import lax
from jax.experimental import pallas as pl
from jax.experimental.pallas import tpu as pltpu

_OUT_LANES = 128


def _loss_kernel(pre_ref, post_ref, tgt_ref, md_ref, td_ref, out_ref,
                 acc_pre_l1, acc_pre_l2, acc_post_l1, acc_post_l2, *,
                 rows_total, tile_rows, chunk_rows, n_chunks, n_tiles,
                 needs_mask, dur_scale, inv_n_mel, inv_n_dur):
    # program_id only at kernel top level; the value is reused inside pl.when
    # bodies (never re-bound there).
    i = pl.program_id(0)
    m = pre_ref.shape[1]

    @pl.when(i == 0)
    def _init():
        z = jnp.zeros((1, m), jnp.float32)
        acc_pre_l1[...] = z
        acc_pre_l2[...] = z
        acc_post_l1[...] = z
        acc_post_l2[...] = z

    def tile_partials(masked):
        # Fold the current tile into four (1, m) partial sums, chunk by chunk,
        # so elementwise temporaries stay chunk-sized.
        def chunk_partials(c, carry):
            a1, a2, b1, b2 = carry
            r0 = c * chunk_rows
            pre = pre_ref[pl.ds(r0, chunk_rows), :].astype(jnp.float32)
            post = post_ref[pl.ds(r0, chunk_rows), :].astype(jnp.float32)
            tgt = tgt_ref[pl.ds(r0, chunk_rows), :].astype(jnp.float32)
            dp = pre - tgt
            dq = post - tgt
            if masked:
                grow = (i * tile_rows + r0 +
                        lax.broadcasted_iota(jnp.int32, (chunk_rows, 1), 0))
                valid = grow < rows_total
                dp = jnp.where(valid, dp, 0.0)
                dq = jnp.where(valid, dq, 0.0)
            a1 = a1 + jnp.sum(jnp.abs(dp), axis=0, keepdims=True)
            a2 = a2 + jnp.sum(dp * dp, axis=0, keepdims=True)
            b1 = b1 + jnp.sum(jnp.abs(dq), axis=0, keepdims=True)
            b2 = b2 + jnp.sum(dq * dq, axis=0, keepdims=True)
            return a1, a2, b1, b2

        z = jnp.zeros((1, m), jnp.float32)
        init = (z, z, z, z)
        if n_chunks == 1:
            a1, a2, b1, b2 = chunk_partials(0, init)
        else:
            a1, a2, b1, b2 = lax.fori_loop(0, n_chunks, chunk_partials, init)
        acc_pre_l1[...] += a1
        acc_pre_l2[...] += a2
        acc_post_l1[...] += b1
        acc_post_l2[...] += b2

    if needs_mask:
        # Only the final tile can overhang the array; all other tiles take the
        # mask-free path (no extra per-element selects on the hot path).
        @pl.when(i < n_tiles - 1)
        def _bulk():
            tile_partials(False)

        @pl.when(i == n_tiles - 1)
        def _tail():
            tile_partials(True)
    else:
        tile_partials(False)

    # Epilogue: cross-lane reductions, duration MSE and a single lane-dense
    # (1, 128) store, once on the last grid step.
    @pl.when(i == n_tiles - 1)
    def _epilogue():
        s_pre = jnp.sum(acc_pre_l1[...]) + jnp.sum(acc_pre_l2[...])
        s_post = jnp.sum(acc_post_l1[...]) + jnp.sum(acc_post_l2[...])

        md = md_ref[...].astype(jnp.float32)
        td = td_ref[...].astype(jnp.float32)
        dd = (md - td) * dur_scale
        s_dur = jnp.sum(dd * dd)

        loss_pre = s_pre * inv_n_mel
        loss_post = s_post * inv_n_mel
        loss_dur = s_dur * inv_n_dur

        lane = lax.broadcasted_iota(jnp.int32, (1, _OUT_LANES), 1)
        res = (jnp.where(lane == 0, loss_pre, 0.0)
               + jnp.where(lane == 1, loss_post, 0.0)
               + jnp.where(lane == 2, loss_dur, 0.0))
        out_ref[...] = res


def non_attentive_tacotron_loss(prenet_mels, postnet_mels, model_durations,
                                target_durations, target_mels,
                                sample_rate: int, hop_size: int, *,
                                target_block_bytes: int = 4 * 1024 * 1024,
                                chunk_rows: int = 256):
    """Returns (loss_prenet, loss_postnet, loss_durations), matching torch."""
    m = prenet_mels.shape[-1]
    # Free reshapes (no copy): (B, T, M) -> (B*T, M); durations -> (1, N).
    pre2 = prenet_mels.reshape(-1, m)
    post2 = postnet_mels.reshape(-1, m)
    tgt2 = target_mels.reshape(-1, m)
    rows = pre2.shape[0]
    md2 = model_durations.reshape(1, -1)
    td2 = target_durations.reshape(1, -1)
    n_dur = md2.shape[1]

    itemsize = jnp.dtype(prenet_mels.dtype).itemsize
    bytes_per_row = max(1, m * itemsize)
    if rows <= chunk_rows:
        tile_rows = rows            # whole-array block (always a legal block)
        c_rows = rows
    else:
        c_rows = chunk_rows
        by_bytes = max(c_rows,
                       (target_block_bytes // bytes_per_row) // c_rows * c_rows)
        tile_rows = int(min(by_bytes, (rows // c_rows) * c_rows))
    n_tiles = -(-rows // tile_rows)
    n_chunks = tile_rows // c_rows
    needs_mask = (rows % tile_rows) != 0

    kernel = functools.partial(
        _loss_kernel,
        rows_total=rows, tile_rows=tile_rows, chunk_rows=c_rows,
        n_chunks=n_chunks, n_tiles=n_tiles, needs_mask=needs_mask,
        dur_scale=float(hop_size) / float(sample_rate),
        inv_n_mel=1.0 / float(rows * m),
        inv_n_dur=1.0 / float(n_dur * md2.shape[0]))

    mel_spec = pl.BlockSpec((tile_rows, m), lambda t: (t, 0))
    dur_spec = pl.BlockSpec((1, n_dur), lambda t: (0, 0))   # resident, DMA'd once

    out = pl.pallas_call(
        kernel,
        out_shape=jax.ShapeDtypeStruct((1, _OUT_LANES), jnp.float32),
        grid_spec=pltpu.PrefetchScalarGridSpec(
            num_scalar_prefetch=0,
            grid=(n_tiles,),
            in_specs=[mel_spec, mel_spec, mel_spec, dur_spec, dur_spec],
            out_specs=pl.BlockSpec((1, _OUT_LANES), lambda t: (0, 0)),
            scratch_shapes=[pltpu.VMEM((1, m), jnp.float32)
                            for _ in range(4)]),
        compiler_params=pltpu.CompilerParams(
            dimension_semantics=("arbitrary",),
            vmem_limit_bytes=40 * 1024 * 1024),
    )(pre2, post2, tgt2, md2, td2)

    return out[0, 0], out[0, 1], out[0, 2]


def _reference(prenet_mels, postnet_mels, model_durations, target_durations,
               target_mels, sample_rate, hop_size):
    l1 = lambda a, b: jnp.mean(jnp.abs(a - b))
    l2 = lambda a, b: jnp.mean((a - b) ** 2)
    lp = l1(prenet_mels, target_mels) + l2(prenet_mels, target_mels)
    lq = l1(postnet_mels, target_mels) + l2(postnet_mels, target_mels)
    s = hop_size / sample_rate
    ld = l2(model_durations * s, target_durations * s)
    return lp, lq, ld


if __name__ == "__main__":
    key = jax.random.PRNGKey(0)
    sample_rate, hop_size = 22050, 256

    # --- Test 1: small shapes, single tile / single chunk path. ---
    k1, k2, k3, k4, k5, key = jax.random.split(key, 6)
    B, T, M = 2, 16, 32
    T_text = 8
    prenet = jax.random.normal(k1, (B, T, M), jnp.float32)
    postnet = jax.random.normal(k2, (B, T, M), jnp.float32)
    target = jax.random.normal(k3, (B, T, M), jnp.float32)
    mdur = jax.random.uniform(k4, (B, T_text), jnp.float32) * 20.0
    tdur = jax.random.uniform(k5, (B, T_text), jnp.float32) * 20.0

    got = non_attentive_tacotron_loss(prenet, postnet, mdur, tdur, target,
                                      sample_rate, hop_size)
    got = jax.block_until_ready(got)
    exp = _reference(prenet, postnet, mdur, tdur, target, sample_rate, hop_size)
    for g, e in zip(got, exp):
        assert jnp.allclose(g, e, rtol=1e-5, atol=1e-5), (g, e)

    # --- Test 2: force multiple tiles + ragged tail + in-kernel chunk loop. ---
    k1, k2, k3, k4, k5, key = jax.random.split(key, 6)
    B2, T2, M2 = 3, 11, 48          # rows = 33 (not a multiple of the tile)
    T_text2 = 5
    prenet2 = jax.random.normal(k1, (B2, T2, M2), jnp.float32)
    postnet2 = jax.random.normal(k2, (B2, T2, M2), jnp.float32)
    target2 = jax.random.normal(k3, (B2, T2, M2), jnp.float32)
    mdur2 = jax.random.uniform(k4, (B2, T_text2), jnp.float32) * 20.0
    tdur2 = jax.random.uniform(k5, (B2, T_text2), jnp.float32) * 20.0

    got2 = non_attentive_tacotron_loss(prenet2, postnet2, mdur2, tdur2, target2,
                                       sample_rate, hop_size,
                                       target_block_bytes=4096, chunk_rows=8)
    got2 = jax.block_until_ready(got2)
    exp2 = _reference(prenet2, postnet2, mdur2, tdur2, target2,
                      sample_rate, hop_size)
    for g, e in zip(got2, exp2):
        assert jnp.allclose(g, e, rtol=1e-5, atol=1e-5), (g, e)

    print("KERNEL_OK")
</pallas_src>

<mosaic_0001>
module attributes {stable_mosaic.version = 11 : i64} {
  func.func @_loss_kernel(%arg0: i32, %arg1: memref<32x32xf32, #tpu.memory_space<vmem>>, %arg2: memref<32x32xf32, #tpu.memory_space<vmem>>, %arg3: memref<32x32xf32, #tpu.memory_space<vmem>>, %arg4: memref<1x16xf32, #tpu.memory_space<vmem>>, %arg5: memref<1x16xf32, #tpu.memory_space<vmem>>, %arg6: memref<1x128xf32, #tpu.memory_space<vmem>>, %arg7: memref<1x32xf32, #tpu.memory_space<vmem>>, %arg8: memref<1x32xf32, #tpu.memory_space<vmem>>, %arg9: memref<1x32xf32, #tpu.memory_space<vmem>>, %arg10: memref<1x32xf32, #tpu.memory_space<vmem>>) attributes {dimension_semantics = [#tpu.dimension_semantics<arbitrary>], iteration_bounds = array<i64: 1>, scalar_prefetch = 0 : i64, scratch_operands = 4 : i64, tpu.core_type = #tpu.core_type<tc>, window_params = [{transform_indices = @transform_0, window_bounds = array<i64: 32, 32>}, {transform_indices = @transform_1, window_bounds = array<i64: 32, 32>}, {transform_indices = @transform_2, window_bounds = array<i64: 32, 32>}, {pipeline_mode = #tpu.pipeline_mode<synchronous>, transform_indices = @transform_3, window_bounds = array<i64: 1, 16>}, {pipeline_mode = #tpu.pipeline_mode<synchronous>, transform_indices = @transform_4, window_bounds = array<i64: 1, 16>}, {pipeline_mode = #tpu.pipeline_mode<synchronous>, transform_indices = @transform_5, window_bounds = array<i64: 1, 128>}]} {
    %c0_i32 = arith.constant 0 : i32
    %0 = arith.cmpi eq, %arg0, %c0_i32 : i32
    %1 = arith.extui %0 : i1 to i32
    %c0_i32_0 = arith.constant 0 : i32
    %2 = arith.cmpi ne, %1, %c0_i32_0 : i32
    scf.if %2 {
      %cst_28 = arith.constant 0.000000e+00 : f32
      %40 = vector.broadcast %cst_28 : f32 to vector<1x32xf32>
      %c0_29 = arith.constant 0 : index
      %c0_30 = arith.constant 0 : index
      %41 = vector.load %arg7[%c0_29, %c0_30] : memref<1x32xf32, #tpu.memory_space<vmem>>, vector<1x32xf32>
      tpu.vector_store %arg7[%c0_29, %c0_30], %40 {strides = array<i32>} : memref<1x32xf32, #tpu.memory_space<vmem>>, vector<1x32xf32>,
      %c0_31 = arith.constant 0 : index
      %c0_32 = arith.constant 0 : index
      %42 = vector.load %arg8[%c0_31, %c0_32] : memref<1x32xf32, #tpu.memory_space<vmem>>, vector<1x32xf32>
      tpu.vector_store %arg8[%c0_31, %c0_32], %40 {strides = array<i32>} : memref<1x32xf32, #tpu.memory_space<vmem>>, vector<1x32xf32>,
      %c0_33 = arith.constant 0 : index
      %c0_34 = arith.constant 0 : index
      %43 = vector.load %arg9[%c0_33, %c0_34] : memref<1x32xf32, #tpu.memory_space<vmem>>, vector<1x32xf32>
      tpu.vector_store %arg9[%c0_33, %c0_34], %40 {strides = array<i32>} : memref<1x32xf32, #tpu.memory_space<vmem>>, vector<1x32xf32>,
      %c0_35 = arith.constant 0 : index
      %c0_36 = arith.constant 0 : index
      %44 = vector.load %arg10[%c0_35, %c0_36] : memref<1x32xf32, #tpu.memory_space<vmem>>, vector<1x32xf32>
      tpu.vector_store %arg10[%c0_35, %c0_36], %40 {strides = array<i32>} : memref<1x32xf32, #tpu.memory_space<vmem>>, vector<1x32xf32>,
    } else {
    }
    %cst = arith.constant 0.000000e+00 : f32
    %3 = vector.broadcast %cst : f32 to vector<1x32xf32>
    %c0 = arith.constant 0 : index
    %c0_1 = arith.constant 0 : index
    %4 = vector.load %arg1[%c0, %c0_1] : memref<32x32xf32, #tpu.memory_space<vmem>>, vector<32x32xf32>
    %c0_2 = arith.constant 0 : index
    %c0_3 = arith.constant 0 : index
    %5 = vector.load %arg2[%c0_2, %c0_3] : memref<32x32xf32, #tpu.memory_space<vmem>>, vector<32x32xf32>
    %c0_4 = arith.constant 0 : index
    %c0_5 = arith.constant 0 : index
    %6 = vector.load %arg3[%c0_4, %c0_5] : memref<32x32xf32, #tpu.memory_space<vmem>>, vector<32x32xf32>
    %7 = arith.subf %4, %6 : vector<32x32xf32>
    %8 = arith.subf %5, %6 : vector<32x32xf32>
    %9 = math.absf %7 : vector<32x32xf32>
    %cst_6 = arith.constant dense<0.000000e+00> : vector<32xf32>
    %10 = vector.multi_reduction <add>, %9, %cst_6 [0] : vector<32x32xf32> to vector<32xf32>
    %11 = vector.shape_cast %10 : vector<32xf32> to vector<1x32xf32>
    %12 = arith.addf %3, %11 : vector<1x32xf32>
    %13 = arith.mulf %7, %7 : vector<32x32xf32>
    %cst_7 = arith.constant dense<0.000000e+00> : vector<32xf32>
    %14 = vector.multi_reduction <add>, %13, %cst_7 [0] : vector<32x32xf32> to vector<32xf32>
    %15 = vector.shape_cast %14 : vector<32xf32> to vector<1x32xf32>
    %16 = arith.addf %3, %15 : vector<1x32xf32>
    %17 = math.absf %8 : vector<32x32xf32>
    %cst_8 = arith.constant dense<0.000000e+00> : vector<32xf32>
    %18 = vector.multi_reduction <add>, %17, %cst_8 [0] : vector<32x32xf32> to vector<32xf32>
    %19 = vector.shape_cast %18 : vector<32xf32> to vector<1x32xf32>
    %20 = arith.addf %3, %19 : vector<1x32xf32>
    %21 = arith.mulf %8, %8 : vector<32x32xf32>
    %cst_9 = arith.constant dense<0.000000e+00> : vector<32xf32>
    %22 = vector.multi_reduction <add>, %21, %cst_9 [0] : vector<32x32xf32> to vector<32xf32>
    %23 = vector.shape_cast %22 : vector<32xf32> to vector<1x32xf32>
    %24 = arith.addf %3, %23 : vector<1x32xf32>
    %c0_10 = arith.constant 0 : index
    %c0_11 = arith.constant 0 : index
    %25 = vector.load %arg7[%c0_10, %c0_11] : memref<1x32xf32, #tpu.memory_space<vmem>>, vector<1x32xf32>
    %26 = arith.addf %25, %12 : vector<1x32xf32>
    %c0_12 = arith.constant 0 : index
    %c0_13 = arith.constant 0 : index
    %27 = vector.load %arg7[%c0_12, %c0_13] : memref<1x32xf32, #tpu.memory_space<vmem>>, vector<1x32xf32>
    tpu.vector_store %arg7[%c0_12, %c0_13], %26 {strides = array<i32>} : memref<1x32xf32, #tpu.memory_space<vmem>>, vector<1x32xf32>,
    %c0_14 = arith.constant 0 : index
    %c0_15 = arith.constant 0 : index
    %28 = vector.load %arg8[%c0_14, %c0_15] : memref<1x32xf32, #tpu.memory_space<vmem>>, vector<1x32xf32>
    %29 = arith.addf %28, %16 : vector<1x32xf32>
    %c0_16 = arith.constant 0 : index
    %c0_17 = arith.constant 0 : index
    %30 = vector.load %arg8[%c0_16, %c0_17] : memref<1x32xf32, #tpu.memory_space<vmem>>, vector<1x32xf32>
    tpu.vector_store %arg8[%c0_16, %c0_17], %29 {strides = array<i32>} : memref<1x32xf32, #tpu.memory_space<vmem>>, vector<1x32xf32>,
    %c0_18 = arith.constant 0 : index
    %c0_19 = arith.constant 0 : index
    %31 = vector.load %arg9[%c0_18, %c0_19] : memref<1x32xf32, #tpu.memory_space<vmem>>, vector<1x32xf32>
    %32 = arith.addf %31, %20 : vector<1x32xf32>
    %c0_20 = arith.constant 0 : index
    %c0_21 = arith.constant 0 : index
    %33 = vector.load %arg9[%c0_20, %c0_21] : memref<1x32xf32, #tpu.memory_space<vmem>>, vector<1x32xf32>
    tpu.vector_store %arg9[%c0_20, %c0_21], %32 {strides = array<i32>} : memref<1x32xf32, #tpu.memory_space<vmem>>, vector<1x32xf32>,
    %c0_22 = arith.constant 0 : index
    %c0_23 = arith.constant 0 : index
    %34 = vector.load %arg10[%c0_22, %c0_23] : memref<1x32xf32, #tpu.memory_space<vmem>>, vector<1x32xf32>
    %35 = arith.addf %34, %24 : vector<1x32xf32>
    %c0_24 = arith.constant 0 : index
    %c0_25 = arith.constant 0 : index
    %36 = vector.load %arg10[%c0_24, %c0_25] : memref<1x32xf32, #tpu.memory_space<vmem>>, vector<1x32xf32>
    tpu.vector_store %arg10[%c0_24, %c0_25], %35 {strides = array<i32>} : memref<1x32xf32, #tpu.memory_space<vmem>>, vector<1x32xf32>,
    %c0_i32_26 = arith.constant 0 : i32
    %37 = arith.cmpi eq, %arg0, %c0_i32_26 : i32
    %38 = arith.extui %37 : i1 to i32
    %c0_i32_27 = arith.constant 0 : i32
    %39 = arith.cmpi ne, %38, %c0_i32_27 : i32
    scf.if %39 {
      %c0_28 = arith.constant 0 : index
      %c0_29 = arith.constant 0 : index
      %40 = vector.load %arg7[%c0_28, %c0_29] : memref<1x32xf32, #tpu.memory_space<vmem>>, vector<1x32xf32>
      %41 = vector.shape_cast %40 : vector<1x32xf32> to vector<1x1x32xf32>
      %cst_30 = arith.constant dense<0.000000e+00> : vector<1xf32>
      %42 = vector.multi_reduction <add>, %41, %cst_30 [1, 2] : vector<1x1x32xf32> to vector<1xf32>
      %43 = vector.shape_cast %42 : vector<1xf32> to vector<1x1x1xf32>
      %44 = vector.extract %43[0, 0, 0] : f32 from vector<1x1x1xf32>
      %c0_31 = arith.constant 0 : index
      %c0_32 = arith.constant 0 : index
      %45 = vector.load %arg8[%c0_31, %c0_32] : memref<1x32xf32, #tpu.memory_space<vmem>>, vector<1x32xf32>
      %46 = vector.shape_cast %45 : vector<1x32xf32> to vector<1x1x32xf32>
      %cst_33 = arith.constant dense<0.000000e+00> : vector<1xf32>
      %47 = vector.multi_reduction <add>, %46, %cst_33 [1, 2] : vector<1x1x32xf32> to vector<1xf32>
      %48 = vector.shape_cast %47 : vector<1xf32> to vector<1x1x1xf32>
      %49 = vector.extract %48[0, 0, 0] : f32 from vector<1x1x1xf32>
      %50 = arith.addf %44, %49 : f32
      %c0_34 = arith.constant 0 : index
      %c0_35 = arith.constant 0 : index
      %51 = vector.load %arg9[%c0_34, %c0_35] : memref<1x32xf32, #tpu.memory_space<vmem>>, vector<1x32xf32>
      %52 = vector.shape_cast %51 : vector<1x32xf32> to vector<1x1x32xf32>
      %cst_36 = arith.constant dense<0.000000e+00> : vector<1xf32>
      %53 = vector.multi_reduction <add>, %52, %cst_36 [1, 2] : vector<1x1x32xf32> to vector<1xf32>
      %54 = vector.shape_cast %53 : vector<1xf32> to vector<1x1x1xf32>
      %55 = vector.extract %54[0, 0, 0] : f32 from vector<1x1x1xf32>
      %c0_37 = arith.constant 0 : index
      %c0_38 = arith.constant 0 : index
      %56 = vector.load %arg10[%c0_37, %c0_38] : memref<1x32xf32, #tpu.memory_space<vmem>>, vector<1x32xf32>
      %57 = vector.shape_cast %56 : vector<1x32xf32> to vector<1x1x32xf32>
      %cst_39 = arith.constant dense<0.000000e+00> : vector<1xf32>
      %58 = vector.multi_reduction <add>, %57, %cst_39 [1, 2] : vector<1x1x32xf32> to vector<1xf32>
      %59 = vector.shape_cast %58 : vector<1xf32> to vector<1x1x1xf32>
      %60 = vector.extract %59[0, 0, 0] : f32 from vector<1x1x1xf32>
      %61 = arith.addf %55, %60 : f32
      %c0_40 = arith.constant 0 : index
      %c0_41 = arith.constant 0 : index
      %62 = vector.load %arg4[%c0_40, %c0_41] : memref<1x16xf32, #tpu.memory_space<vmem>>, vector<1x16xf32>
      %c0_42 = arith.constant 0 : index
      %c0_43 = arith.constant 0 : index
      %63 = vector.load %arg5[%c0_42, %c0_43] : memref<1x16xf32, #tpu.memory_space<vmem>>, vector<1x16xf32>
      %64 = arith.subf %62, %63 : vector<1x16xf32>
      %cst_44 = arith.constant 0.0116099771 : f32
      %65 = vector.broadcast %cst_44 : f32 to vector<1x16xf32>
      %66 = arith.mulf %64, %65 : vector<1x16xf32>
      %67 = arith.mulf %66, %66 : vector<1x16xf32>
      %68 = vector.shape_cast %67 : vector<1x16xf32> to vector<1x1x16xf32>
      %cst_45 = arith.constant dense<0.000000e+00> : vector<1xf32>
      %69 = vector.multi_reduction <add>, %68, %cst_45 [1, 2] : vector<1x1x16xf32> to vector<1xf32>
      %70 = vector.shape_cast %69 : vector<1xf32> to vector<1x1x1xf32>
      %71 = vector.extract %70[0, 0, 0] : f32 from vector<1x1x1xf32>
      %cst_46 = arith.constant 9.765625E-4 : f32
      %72 = arith.mulf %50, %cst_46 : f32
      %cst_47 = arith.constant 9.765625E-4 : f32
      %73 = arith.mulf %61, %cst_47 : f32
      %cst_48 = arith.constant 6.250000e-02 : f32
      %74 = arith.mulf %71, %cst_48 : f32
      %75 = tpu.iota {dimensions = array<i32: 1>} : vector<1x128xi32>
      %c0_i32_49 = arith.constant 0 : i32
      %76 = vector.broadcast %c0_i32_49 : i32 to vector<1x128xi32>
      %77 = arith.cmpi eq, %75, %76 : vector<1x128xi32>
      %cst_50 = arith.constant 0.000000e+00 : f32
      %78 = vector.broadcast %72 : f32 to vector<1x128xf32>
      %79 = vector.broadcast %cst_50 : f32 to vector<1x128xf32>
      %80 = arith.select %77, %78, %79 : vector<1x128xi1>, vector<1x128xf32>
      %c1_i32 = arith.constant 1 : i32
      %81 = vector.broadcast %c1_i32 : i32 to vector<1x128xi32>
      %82 = arith.cmpi eq, %75, %81 : vector<1x128xi32>
      %cst_51 = arith.constant 0.000000e+00 : f32
      %83 = vector.broadcast %73 : f32 to vector<1x128xf32>
      %84 = vector.broadcast %cst_51 : f32 to vector<1x128xf32>
      %85 = arith.select %82, %83, %84 : vector<1x128xi1>, vector<1x128xf32>
      %86 = arith.addf %80, %85 : vector<1x128xf32>
      %c2_i32 = arith.constant 2 : i32
      %87 = vector.broadcast %c2_i32 : i32 to vector<1x128xi32>
      %88 = arith.cmpi eq, %75, %87 : vector<1x128xi32>
      %cst_52 = arith.constant 0.000000e+00 : f32
      %89 = vector.broadcast %74 : f32 to vector<1x128xf32>
      %90 = vector.broadcast %cst_52 : f32 to vector<1x128xf32>
      %91 = arith.select %88, %89, %90 : vector<1x128xi1>, vector<1x128xf32>
      %92 = arith.addf %86, %91 : vector<1x128xf32>
      %c0_53 = arith.constant 0 : index
      %c0_54 = arith.constant 0 : index
      %93 = vector.load %arg6[%c0_53, %c0_54] : memref<1x128xf32, #tpu.memory_space<vmem>>, vector<1x128xf32>
      tpu.vector_store %arg6[%c0_53, %c0_54], %92 {strides = array<i32>} : memref<1x128xf32, #tpu.memory_space<vmem>>, vector<1x128xf32>,
    } else {
    }
    return
  }
  func.func @transform_0(%arg0: i32) -> (i32, i32) {
    %c0_i32 = arith.constant 0 : i32
    %c0_i32_0 = arith.constant 0 : i32
    return %arg0, %c0_i32 : i32, i32
  }
  func.func @transform_1(%arg0: i32) -> (i32, i32) {
    %c0_i32 = arith.constant 0 : i32
    %c0_i32_0 = arith.constant 0 : i32
    return %arg0, %c0_i32 : i32, i32
  }
  func.func @transform_2(%arg0: i32) -> (i32, i32) {
    %c0_i32 = arith.constant 0 : i32
    %c0_i32_0 = arith.constant 0 : i32
    return %arg0, %c0_i32 : i32, i32
  }
  func.func @transform_3(%arg0: i32) -> (i32, i32) {
    %c0_i32 = arith.constant 0 : i32
    %c0_i32_0 = arith.constant 0 : i32
    %c0_i32_1 = arith.constant 0 : i32
    return %c0_i32, %c0_i32_0 : i32, i32
  }
  func.func @transform_4(%arg0: i32) -> (i32, i32) {
    %c0_i32 = arith.constant 0 : i32
    %c0_i32_0 = arith.constant 0 : i32
    %c0_i32_1 = arith.constant 0 : i32
    return %c0_i32, %c0_i32_0 : i32, i32
  }
  func.func @transform_5(%arg0: i32) -> (i32, i32) {
    %c0_i32 = arith.constant 0 : i32
    %c0_i32_0 = arith.constant 0 : i32
    %c0_i32_1 = arith.constant 0 : i32
    return %c0_i32, %c0_i32_0 : i32, i32
  }
}

</mosaic_0001>

<bundles_post_ra>
// kernel: tpu_custom_call.1
= control target key start
LH: loop header
LB: loop body
LE: loop exit
PB: predicated region body
PF: predicated region fallthrough
CT: control target
= control target key end

     0   :  { %10 = vsyncpa [#allocation7], 0  ;;  %s461_s0 = inlined_call_operand.hbm [shape: f32[32,32], index: 0, kind: input, shape index: {}]   ;;  %s462_s1 = inlined_call_operand.hbm [shape: f32[32,32], index: 1, kind: input, shape index: {}]   ;;  %s463_s2 = inlined_call_operand.hbm [shape: f32[32,32], index: 2, kind: input, shape index: {}]   ;;  %s464_s3 = inlined_call_operand.vmem [shape: f32[1,16], index: 3, kind: input, shape index: {}]   ;;  %s465_s4 = inlined_call_operand.vmem [shape: f32[1,16], index: 4, kind: input, shape index: {}]   ;;  %s466_s5 = inlined_call_operand.hbm [shape: f32[1,128], index: 5, kind: output, shape index: {}]  }
   0x1   :  { %11 = vsyncpa [#allocation10], 0 }
   0x2   :  { %12 = vsyncpa [#allocation8], 0  ;;  %s378_s18 = smov [#allocation9]   ;;  %s379_s20 = smov [#allocation6]  }
   0x3   :  { %s30_s19 = sshll.u32 %s378_s18, 4  ;;  %s18_s21 = sshll.u32 %s379_s20, 4  ;;  %s31_s19 = int_to_ptr.vmem [resolvable:$true] %s30_s19  ;;  %s19_s21 = int_to_ptr.vmem [resolvable:$true] %s18_s21 }
   0x4   :  { %s300_s22 = scalar_lea.vmem %s31_s19, 512  ;;  %p305_p1 = scmp.lt.s32.totalorder %s31_s19, %s31_s19 }
   0x5   :  { %p301_p0 = scmp.ne.s32.totalorder %s31_s19, %s300_s22  ;;  %p306_p2 = scmp.lt.s32.totalorder %s300_s22, %s300_s22 }
   0x7   :  { %p307_p3 = por %p306_p2, %p305_p1 }
   0x9   :  { %p308_p4 = pnand %p307_p3, %p301_p0 }
   0xb   :  { %311 = shalt.err (!%p308_p4)
}
   0xc   :  { %s380_s23 = smov 128   ;;  %s381_s24 = smov 8  }
   0xd   :  { %36 = dma.hbm_to_vmem [thread:$0]  %s462_s1, 512, %s31_s19, [#allocation10], %s380_s23, %s380_s23, %s381_s24  }
   0xe   :  { %s320_s27 = scalar_lea.vmem %s19_s21, 512  ;;  %p325_p6 = scmp.lt.s32.totalorder %s19_s21, %s19_s21 }
   0xf   :  { %p321_p5 = scmp.ne.s32.totalorder %s19_s21, %s320_s27  ;;  %p326_p7 = scmp.lt.s32.totalorder %s320_s27, %s320_s27 }
  0x11   :  { %p327_p8 = por %p326_p7, %p325_p6 }
  0x13   :  { %p328_p9 = pnand %p327_p8, %p321_p5 }
  0x15   :  { %331 = shalt.err (!%p328_p9)
}
  0x16   :  { %24 = dma.hbm_to_vmem [thread:$0]  %s461_s0, 512, %s19_s21, [#allocation7], %s380_s23, %s380_s23, %s381_s24  }
  0x17   :  { %s382_s30 = smov [#allocation11]  }
  0x18   :  { %s42_s6 = sshll.u32 %s382_s30, 4  ;;  %s43_s6 = int_to_ptr.vmem [resolvable:$true] %s42_s6 }
  0x19   :  { %s340_s7 = scalar_lea.vmem %s43_s6, 512  ;;  %p345_p11 = scmp.lt.s32.totalorder %s43_s6, %s43_s6 }
  0x1a   :  { %p341_p10 = scmp.ne.s32.totalorder %s43_s6, %s340_s7  ;;  %p346_p12 = scmp.lt.s32.totalorder %s340_s7, %s340_s7 }
  0x1c   :  { %p347_p13 = por %p346_p12, %p345_p11 }
  0x1e   :  { %p348_p0 = pnand %p347_p13, %p341_p10 }
  0x20   :  { %351 = shalt.err (!%p348_p0)
}
  0x21   :  { %48 = dma.hbm_to_vmem [thread:$0]  %s463_s2, 512, %s43_s6, [#allocation10], %s380_s23, %s380_s23, %s381_s24  }
  0x22   :  { %372 = dma.done.wait [#allocation7], 512  }
  0x23   :  { %373 = vsyncadd [#allocation7], 4294966784 }
  0x24   :  { %374 = dma.done.wait [#allocation10], 1024  }
  0x25   :  { %375 = vsyncadd [#allocation10], 4294966272  ;;  %vm66_vm0 = vcmask 253952   ;;  %v383_v0 = vmov 0.0   ;;  %v75_v1 = vld [vmem:[#allocation9] sm:$0xff]  ;;  %v76_v2 = vld [vmem:[#allocation9 + $0x8] sm:$0xff] }
  0x26   :  { %69 = vst.msk [vmem:[#allocation4] sm:$0x1] %vm66_vm0, %v383_v0  ;;  %67 = vst.msk [vmem:[#allocation2] sm:$0x1] %vm66_vm0, %v383_v0  ;;  %v77_v3 = vld [vmem:[#allocation9 + $0x10] sm:$0xff]  ;;  %v78_v4 = vld [vmem:[#allocation9 + $0x18] sm:$0xff] }
  0x27   :  { %68 = vst.msk [vmem:[#allocation3] sm:$0x1] %vm66_vm0, %v383_v0  ;;  %70 = vst.msk [vmem:[#allocation5] sm:$0x1] %vm66_vm0, %v383_v0  ;;  %v79_v5 = vld [vmem:[#allocation11] sm:$0xff]  ;;  %v80_v6 = vld [vmem:[#allocation11 + $0x8] sm:$0xff] }
  0x28   :  { %v81_v7 = vld [vmem:[#allocation11 + $0x10] sm:$0xff]  ;;  %v82_v8 = vld [vmem:[#allocation11 + $0x18] sm:$0xff]  ;;  %v87_v9 = vsub.f32 %v75_v1, %v79_v5  ;;  %v88_v10 = vsub.f32 %v76_v2, %v80_v6  ;;  %vm95_vm1 = vcmask 261120   ;;  %v71_v13 = vld [vmem:[#allocation6] sm:$0xff]  ;;  %vm231_vm2 = vcmask 122880   ;;  %s384_s19 = smov [#allocation12]  }
  0x29   :  { %v89_v11 = vsub.f32 %v77_v3, %v81_v7  ;;  %v90_v12 = vsub.f32 %v78_v4, %v82_v8  ;;  %v72_v14 = vld [vmem:[#allocation6 + $0x8] sm:$0xff]  ;;  %v73_v15 = vld [vmem:[#allocation6 + $0x10] sm:$0xff]  ;;  %v74_v18 = vld [vmem:[#allocation6 + $0x18] sm:$0xff]  ;;  %v83_v19 = vsub.f32 %v71_v13, %v79_v5  ;;  %s265_s20 = sshll.u32 %s384_s19, 4  ;;  %s266_s20 = int_to_ptr.vmem [resolvable:$true] %s265_s20 }
  0x2a   :  { %v128_v16 = vand.u32 2147483647, %v87_v9  ;;  %v129_v17 = vand.u32 2147483647, %v88_v10  ;;  %v84_v20 = vsub.f32 %v72_v14, %v80_v6  ;;  %v85_v23 = vsub.f32 %v73_v15, %v81_v7  ;;  %s352_s21 = scalar_lea.vmem %s266_s20, 16  ;;  %s356_s22 = scalar_lea.vmem %s266_s20, 32 }
  0x2b   :  { %v130_v21 = vand.u32 2147483647, %v89_v11  ;;  %v131_v22 = vand.u32 2147483647, %v90_v12  ;;  %v86_v24 = vsub.f32 %v74_v18, %v82_v8  ;;  %v91_v27 = vand.u32 2147483647, %v83_v19  ;;  %p353_p1 = scmp.ne.s32.totalorder %s266_s20, %s352_s21  ;;  %p357_p2 = scmp.lt.s32.totalorder %s266_s20, %s266_s20 }
  0x2c   :  { %v132_v25 = vsel %vm95_vm1, %v128_v16, 0.0  ;;  %v133_v26 = vsel %vm95_vm1, %v129_v17, 0.0  ;;  %v92_v28 = vand.u32 2147483647, %v84_v20  ;;  %v93_v32 = vand.u32 2147483647, %v85_v23  ;;  %p358_p3 = scmp.lt.s32.totalorder %s356_s22, %s352_s21 }
  0x2d   :  { %v134_v29 = vadd.f32 %v133_v26, %v132_v25  ;;  %v135_v30 = vsel %vm95_vm1, %v130_v21, 0.0  ;;  %v137_v31 = vsel %vm95_vm1, %v131_v22, 0.0  ;;  %v94_v33 = vand.u32 2147483647, %v86_v24  ;;  %v171_v13 = vld [vmem:[#allocation4] sm:$0x1] }
  0x2e   :  { %v96_v34 = vsel %vm95_vm1, %v91_v27, 0.0  ;;  %v97_v35 = vsel %vm95_vm1, %v92_v28, 0.0  ;;  %v146_v36 = vmul.f32 %v87_v9, %v87_v9  ;;  %v99_v39 = vsel %vm95_vm1, %v93_v32, 0.0  ;;  %v164_v18 = vld [vmem:[#allocation2] sm:$0x1]  ;;  %p359_p4 = por %p358_p3, %p357_p2 }
  0x2f   :  { %v136_v37 = vadd.f32 %v135_v30, %v134_v29  ;;  %v98_v38 = vadd.f32 %v97_v35, %v96_v34  ;;  %v147_v40 = vmul.f32 %v88_v10, %v88_v10  ;;  %v101_v41 = vsel %vm95_vm1, %v94_v33, 0.0  ;;  %v174_v25 = vld [vmem:[#allocation5] sm:$0x1]  ;;  %v168_v30 = vld [vmem:[#allocation3] sm:$0x1] }
  0x30   :  { %v148_v42 = vmul.f32 %v89_v11, %v89_v11  ;;  %v149_v43 = vmul.f32 %v90_v12, %v90_v12  ;;  %v150_v44 = vsel %vm95_vm1, %v146_v36, 0.0  ;;  %v110_v48 = vmul.f32 %v83_v19, %v83_v19  ;;  %v227_v32 = vld [vmem:[%s465_s4] sm:$0x1]  ;;  %p360_p5 = pnand %p359_p4, %p353_p1 }
  0x31   :  { %v138_v45 = vadd.f32 %v137_v31, %v136_v37  ;;  %v100_v46 = vadd.f32 %v99_v39, %v98_v38  ;;  %v151_v47 = vsel %vm95_vm1, %v147_v40, 0.0  ;;  %v111_v52 = vmul.f32 %v84_v20, %v84_v20  ;;  %v226_v31 = vld [vmem:[%s464_s3] sm:$0x1] }
  0x32   :  { %v152_v49 = vadd.f32 %v151_v47, %v150_v44  ;;  %v153_v50 = vsel %vm95_vm1, %v148_v42, 0.0  ;;  %v155_v51 = vsel %vm95_vm1, %v149_v43, 0.0  ;;  %v112_v55 = vmul.f32 %v85_v23, %v85_v23 }
  0x33   :  { %v139_v53 = vrot.slane %v138_v45, 4  ;;  %v102_v54 = vadd.f32 %v101_v41, %v100_v46  ;;  %v113_v56 = vmul.f32 %v86_v24, %v86_v24  ;;  %v114_v58 = vsel %vm95_vm1, %v110_v48, 0.0 }
  0x34   :  { %v154_v57 = vadd.f32 %v153_v50, %v152_v49  ;;  %v115_v59 = vsel %vm95_vm1, %v111_v52, 0.0  ;;  %v117_v63 = vsel %vm95_vm1, %v112_v55, 0.0  ;;  %v228_v35 = vsub.f32 %v226_v31, %v227_v32 }
  0x35   :  { %v140_v60 = vadd.f32 %v139_v53, %v138_v45  ;;  %v103_v61 = vrot.slane %v102_v54, 4  ;;  %v116_v62 = vadd.f32 %v115_v59, %v114_v58  ;;  %v119_v1 = vsel %vm95_vm1, %v113_v56, 0.0 }
  0x36   :  { %v156_v0 = vadd.f32 %v155_v51, %v154_v57  ;;  %v229_v40 = vmul.f32 0.011609977, %v228_v35 }
  0x37   :  { %v141_v2 = vrot.slane %v140_v60, 2  ;;  %v104_v3 = vadd.f32 %v103_v61, %v102_v54  ;;  %v118_v4 = vadd.f32 %v117_v63, %v116_v62 }
  0x38   :  { %v157_v5 = vrot.slane %v156_v0, 4  ;;  %v230_v43 = vmul.f32 %v229_v40, %v229_v40 }
  0x39   :  { %v142_v6 = vadd.f32 %v141_v2, %v140_v60  ;;  %v105_v7 = vrot.slane %v104_v3, 2  ;;  %v120_v8 = vadd.f32 %v119_v1, %v118_v4 }
  0x3a   :  { %v158_v9 = vadd.f32 %v157_v5, %v156_v0  ;;  %v232_v46 = vsel %vm231_vm2, %v230_v43, 0.0 }
  0x3b   :  { %v143_v10 = vrot.slane %v142_v6, 1  ;;  %v106_v11 = vadd.f32 %v105_v7, %v104_v3  ;;  %v121_v12 = vrot.slane %v120_v8, 4 }
  0x3c   :  { %v159_v14 = vrot.slane %v158_v9, 2 }
  0x3d   :  { %v144_v15 = vadd.f32 %v143_v10, %v142_v6  ;;  %v107_v16 = vrot.slane %v106_v11, 1  ;;  %v122_v17 = vadd.f32 %v121_v12, %v120_v8 }
  0x3e   :  { %v160_v19 = vadd.f32 %v159_v14, %v158_v9 }
  0x3f   :  { %v172_v20 = vadd.f32 %v171_v13, %v144_v15  ;;  %v108_v21 = vadd.f32 %v107_v16, %v106_v11  ;;  %v123_v22 = vrot.slane %v122_v17, 2 }
  0x40   :  { %v161_v23 = vrot.slane %v160_v19, 1 }
  0x41   :  { %173 = vst.msk [vmem:[#allocation4] sm:$0x1] %vm66_vm0, %v172_v20  ;;  %v165_v24 = vadd.f32 %v164_v18, %v108_v21  ;;  %v124_v26 = vadd.f32 %v123_v22, %v122_v17  ;;  %v245_v18 = vlaneseq }
  0x42   :  { %v162_v27 = vadd.f32 %v161_v23, %v160_v19 }
  0x43   :  { %167 = vst.msk [vmem:[#allocation2] sm:$0x1] %vm66_vm0, %v165_v24  ;;  %v125_v28 = vrot.slane %v124_v26, 1  ;;  %v246_v19 = vand.u32 127, %v245_v18 }
  0x44   :  { %v175_v29 = vadd.f32 %v174_v25, %v162_v27 }
  0x45   :  { %v126_v33 = vadd.f32 %v125_v28, %v124_v26  ;;  %vm247_vm3 = vcmp.eq.s32.totalorder %v246_v19, 0  ;;  %vm250_vm4 = vcmp.eq.s32.totalorder %v246_v19, 1  ;;  %vm254_vm5 = vcmp.eq.s32.totalorder %v246_v19, 2 }
  0x46   :  { %176 = vst.msk [vmem:[#allocation5] sm:$0x1] %vm66_vm0, %v175_v29 }
  0x47   :  { %v169_v34 = vadd.f32 %v168_v30, %v126_v33 }
  0x48   :  { %v203_v36 = vld [vmem:[#allocation4] sm:$0x1] }
  0x49   :  { %v204_v37 = vsel %vm66_vm0, %v203_v36, 0.0  ;;  %170 = vst.msk [vmem:[#allocation3] sm:$0x1] %vm66_vm0, %v169_v34 }
  0x4a   :  { %205 = vadd.xlane.f32.xlu1 %v204_v37  ;;  %v180_v38 = vld [vmem:[#allocation2] sm:$0x1] }
  0x4b   :  { %v181_v39 = vsel %vm66_vm0, %v180_v38, 0.0 }
  0x4c   :  { %182 = vadd.xlane.f32.xlu0 %v181_v39 }
  0x4d   :  { %v214_v41 = vld [vmem:[#allocation5] sm:$0x1] }
  0x4e   :  { %v215_v42 = vsel %vm66_vm0, %v214_v41, 0.0 }
  0x4f   :  { %216 = vadd.xlane.f32.xlu1 %v215_v42 }
  0x50   :  { %v191_v44 = vld [vmem:[#allocation3] sm:$0x1] }
  0x51   :  { %v192_v45 = vsel %vm66_vm0, %v191_v44, 0.0 }
  0x52   :  { %193 = vadd.xlane.f32.xlu0 %v192_v45 }
  0x56   :  { %233 = vadd.xlane.f32.xlu0 %v232_v46 }
  0xd3   :  { %v206_v47 = vpop.xlane.xlu1 %205 }
  0xd4   :  { %v207_v48 = vrot.slane %v206_v47, 4 }
  0xd5   :  { %v183_v49 = vpop.xlane.xlu0 %182 }
  0xd6   :  { %v184_v50 = vrot.slane %v183_v49, 4  ;;  %v208_v51 = vadd.f32 %v207_v48, %v206_v47 }
  0xd8   :  { %v185_v52 = vadd.f32 %v184_v50, %v183_v49  ;;  %v217_v53 = vpop.xlane.xlu1 %216  ;;  %v209_v56 = vrot.slane %v208_v51, 2 }
  0xd9   :  { %v218_v54 = vrot.slane %v217_v53, 4 }
  0xda   :  { %v186_v55 = vrot.slane %v185_v52, 2  ;;  %v210_v2 = vadd.f32 %v209_v56, %v208_v51 }
  0xdb   :  { %v219_v57 = vadd.f32 %v218_v54, %v217_v53  ;;  %v194_v58 = vpop.xlane.xlu0 %193 }
  0xdc   :  { %v195_v59 = vrot.slane %v194_v58, 4  ;;  %v187_v60 = vadd.f32 %v186_v55, %v185_v52  ;;  %v211_v9 = vrot.slane %v210_v2, 1 }
  0xdd   :  { %v220_v61 = vrot.slane %v219_v57, 2 }
  0xde   :  { %v196_v62 = vadd.f32 %v195_v59, %v194_v58  ;;  %v188_v63 = vrot.slane %v187_v60, 1  ;;  %v212_v15 = vadd.f32 %v211_v9, %v210_v2 }
  0xdf   :  { %v221_v0 = vadd.f32 %v220_v61, %v219_v57  ;;  %v234_v1 = vpop.xlane.xlu0 %233 }
  0xe0   :  { %v197_v3 = vrot.slane %v196_v62, 2  ;;  %v235_v4 = vrot.slane %v234_v1, 4  ;;  %v189_v5 = vadd.f32 %v188_v63, %v187_v60 }
  0xe1   :  { %v222_v8 = vrot.slane %v221_v0, 1 }
  0xe2   :  { %v236_v6 = vadd.f32 %v235_v4, %v234_v1  ;;  %275 = vpush %v189_v5  ;;  %v198_v7 = vadd.f32 %v197_v3, %v196_v62 }
  0xe3   :  { %v223_v14 = vadd.f32 %v222_v8, %v221_v0 }
  0xe4   :  { %v237_v10 = vrot.slane %v236_v6, 2  ;;  %v199_v11 = vrot.slane %v198_v7, 1 }
  0xe6   :  { %v238_v12 = vadd.f32 %v237_v10, %v236_v6  ;;  %v200_v13 = vadd.f32 %v199_v11, %v198_v7 }
  0xe8   :  { %277 = vpush %v200_v13  ;;  %v239_v16 = vrot.slane %v238_v12, 1 }
  0xe9   :  { %279 = vpush %v212_v15 }
  0xea   :  { %281 = vpush %v223_v14  ;;  %v240_v17 = vadd.f32 %v239_v16, %v238_v12 }
  0xec   :  { %283 = vpush %v240_v17 }
 0x113   :  { %s276_s3 = spop %275 }
 0x119   :  { %s278_s4 = spop %277 }
 0x11a   :  { %s202_s11 = sadd.f32 %s278_s4, %s276_s3  ;;  %s280_s12 = spop %279 }
 0x11b   :  { %s282_s13 = spop %281 }
 0x11c   :  { %s242_s14 = smul.f32 0.0009765625, %s202_s11  ;;  %s225_s15 = sadd.f32 %s282_s13, %s280_s12 }
 0x11d   :  { %s284_s16 = spop %283 }
 0x11e   :  { %v248_v20 = vstv %s242_s14  ;;  %s243_s17 = smul.f32 0.0009765625, %s225_s15 }
 0x11f   :  { %v249_v21 = vsel %vm247_vm3, %v248_v20, 0.0  ;;  %s244_s18 = smul.f32 0.0625, %s284_s16 }
 0x120   :  { %v251_v22 = vstv %s243_s17 }
 0x121   :  { %v252_v23 = vsel %vm250_vm4, %v251_v22, 0.0  ;;  %v255_v24 = vstv %s244_s18 }
 0x122   :  { %v253_v25 = vadd.f32 %v252_v23, %v249_v21  ;;  %v256_v26 = vsel %vm254_vm5, %v255_v24, 0.0 }
 0x124   :  { %v257_v27 = vadd.f32 %v256_v26, %v253_v25 }
 0x126   :  { %258 = vst [vmem:[#allocation12] sm:$0x1] %v257_v27 }
 0x127   :  { %363 = shalt.err (!%p360_p5)
}
 0x128   :  { %268 = dma.vmem_to_hbm [thread:$0]  %s266_s20, 16, %s466_s5, [#allocation8]  }
 0x129   :  { %376 = dma.done.wait [#allocation8], 16  }
 0x12a   :  { %377 = vsyncadd [#allocation8], 4294967280 }
 0x12b   :  { %272 = vsyncpa [#allocation7], 1 }
 0x12c   :  { %273 = vsyncpa [#allocation10], 1 }
 0x12d   :  { %274 = vsyncpa [#allocation8], 1 }

</bundles_post_ra>
